<compile_context>
chip_gen: v7x
topology: tpu7x:2x2x1
jax: 0.10.0
libtpu: 0.0.40
codegen_flags: <defaults>
</compile_context>

<pallas_src>
import jax
import jax.numpy as jnp
from jax.experimental import pallas as pl
from jax.experimental.pallas import tpu as pltpu


def self_attention_kernel(x_ref, w1_ref, b1_ref, w2_ref, b2_ref, o_ref):
    # x_ref block: (Bb, S, H) f32; w1/w2: (H, H) bf16; b1/b2: (1, H) f32
    Bb, S, H = x_ref.shape
    x = x_ref[...]                                           # (Bb, S, H) f32 (kept for final mul)

    # Projection: Linear -> ReLU -> Linear, batched as one big MXU matmul.
    # Feed the MXU in bf16, accumulate in f32.
    x2 = x.reshape(Bb * S, H).astype(jnp.bfloat16)           # (Bb*S, H)
    h = jnp.dot(x2, w1_ref[...], preferred_element_type=jnp.float32) + b1_ref[...]
    h = jnp.maximum(h, 0.0).astype(jnp.bfloat16)             # ReLU, then bf16 for MXU
    energy = jnp.dot(h, w2_ref[...], preferred_element_type=jnp.float32) + b2_ref[...]
    energy = energy.reshape(Bb, S, H)                        # back to (Bb, S, H), f32

    # Softmax over the sequence axis (torch dim=1), per (batch, hidden) — f32.
    m = jnp.max(energy, axis=1, keepdims=True)               # (Bb, 1, H)
    e = jnp.exp(energy - m)                                   # (Bb, S, H)
    denom = jnp.sum(e, axis=1, keepdims=True)                 # (Bb, 1, H)
    weights = e * pl.reciprocal(denom, approx=True)           # EUP vrcp (free slot)

    o_ref[...] = (x * weights).astype(o_ref.dtype)


def self_attention(x, w1, b1, w2, b2, *, block_b=None):
    """x: (B, S, H) float32. w1/w2: (H, H) laid out as (in, out). b1/b2: (1, H)."""
    B, S, H = x.shape
    itemsize = jnp.dtype(x.dtype).itemsize

    if block_b is None:
        # Fill the MXU M-dimension (~512 rows per step), ...
        target_rows = 512
        block_b = max(1, min(B, pl.cdiv(target_rows, S)))
        # ... stay inside a conservative VMEM budget (x + out, double-buffered),
        # so the tiling also fits v7x's 64 MiB VMEM, ...
        bytes_per_batch = S * H * itemsize * 4            # x + out, 2 buffers each
        max_b = max(1, (24 * 1024 * 1024) // max(1, bytes_per_batch))
        block_b = min(block_b, max_b)
        # ... and keep at least 2 grid steps so both v7x TensorCores get work.
        if B >= 2:
            block_b = min(block_b, B // 2)
        block_b = max(1, block_b)
    while B % block_b:                                     # make block_b divide B
        block_b -= 1
    grid = (B // block_b,)

    # Cast weights to bf16 once at the boundary (halves weight HBM/VMEM traffic,
    # native MXU bf16 on all generations). Biases stay f32.
    w1b = w1.astype(jnp.bfloat16)
    w2b = w2.astype(jnp.bfloat16)

    cost = pl.CostEstimate(
        flops=4 * B * S * H * H,                           # two (B*S,H)x(H,H) matmuls
        transcendentals=B * S * H,                         # exp
        bytes_accessed=2 * B * S * H * itemsize + 2 * H * H * 2 + 2 * H * 4,
    )

    return pl.pallas_call(
        self_attention_kernel,
        out_shape=jax.ShapeDtypeStruct((B, S, H), x.dtype),
        grid_spec=pltpu.PrefetchScalarGridSpec(
            num_scalar_prefetch=0,
            grid=grid,
            in_specs=[
                pl.BlockSpec((block_b, S, H), lambda b: (b, 0, 0)),  # packed x slab
                pl.BlockSpec((H, H), lambda b: (0, 0)),              # W1 (bf16, resident)
                pl.BlockSpec((1, H), lambda b: (0, 0)),              # b1
                pl.BlockSpec((H, H), lambda b: (0, 0)),              # W2 (bf16, resident)
                pl.BlockSpec((1, H), lambda b: (0, 0)),              # b2
            ],
            out_specs=pl.BlockSpec((block_b, S, H), lambda b: (b, 0, 0)),
        ),
        compiler_params=pltpu.CompilerParams(
            dimension_semantics=("parallel",),             # batch axis shards across TCs
            vmem_limit_bytes=48 * 1024 * 1024,             # fits v5e/v6e/v7x
        ),
        cost_estimate=cost,
    )(x, w1b, b1, w2b, b2)


def self_attention_ref(x, w1, b1, w2, b2):
    """Pure-JAX f32 reference matching the PyTorch forward."""
    energy = jnp.maximum(x @ w1 + b1, 0.0) @ w2 + b2
    # squeeze(-1) is a no-op (last dim = H > 1); softmax over dim=1 (sequence)
    weights = jax.nn.softmax(energy, axis=1)
    return x * weights


if __name__ == "__main__":
    B, S, H = 8, 8, 32
    key = jax.random.PRNGKey(0)
    kx, k1, k2, k3, k4 = jax.random.split(key, 5)

    # Deterministic synthetic parameters.
    # PyTorch nn.Linear stores weight as (out, in) and computes x @ W.T + b;
    # here we directly build the (in, out) matrices used in the matmul.
    x = jax.random.normal(kx, (B, S, H), dtype=jnp.float32)
    w1 = jax.random.normal(k1, (H, H), dtype=jnp.float32) * 0.1
    b1 = jax.random.normal(k2, (1, H), dtype=jnp.float32) * 0.1
    w2 = jax.random.normal(k3, (H, H), dtype=jnp.float32) * 0.1
    b2 = jax.random.normal(k4, (1, H), dtype=jnp.float32) * 0.1

    out = self_attention(x, w1, b1, w2, b2)
    out = jax.block_until_ready(out)

    ref = self_attention_ref(x, w1, b1, w2, b2)
    assert out.shape == (B, S, H)
    # Tolerance loosened vs. f32 reference: bf16 matmul inputs + approx reciprocal.
    assert jnp.allclose(out, ref, atol=2e-2, rtol=2e-2), "mismatch vs reference"

    print("KERNEL_OK")
</pallas_src>

<mosaic_0001>
module attributes {stable_mosaic.version = 11 : i64} {
  func.func @self_attention_kernel(%arg0: i32, %arg1: memref<4x8x32xf32, #tpu.memory_space<vmem>>, %arg2: memref<32x32xbf16, #tpu.memory_space<vmem>>, %arg3: memref<1x32xf32, #tpu.memory_space<vmem>>, %arg4: memref<32x32xbf16, #tpu.memory_space<vmem>>, %arg5: memref<1x32xf32, #tpu.memory_space<vmem>>, %arg6: memref<4x8x32xf32, #tpu.memory_space<vmem>>) attributes {dimension_semantics = [#tpu.dimension_semantics<parallel>], iteration_bounds = array<i64: 2>, scalar_prefetch = 0 : i64, scratch_operands = 0 : i64, tpu.core_type = #tpu.core_type<tc>, window_params = [{transform_indices = @transform_0, window_bounds = array<i64: 4, 8, 32>}, {pipeline_mode = #tpu.pipeline_mode<synchronous>, transform_indices = @transform_1, window_bounds = array<i64: 32, 32>}, {pipeline_mode = #tpu.pipeline_mode<synchronous>, transform_indices = @transform_2, window_bounds = array<i64: 1, 32>}, {pipeline_mode = #tpu.pipeline_mode<synchronous>, transform_indices = @transform_3, window_bounds = array<i64: 32, 32>}, {pipeline_mode = #tpu.pipeline_mode<synchronous>, transform_indices = @transform_4, window_bounds = array<i64: 1, 32>}, {transform_indices = @transform_5, window_bounds = array<i64: 4, 8, 32>}]} {
    %c0 = arith.constant 0 : index
    %c0_0 = arith.constant 0 : index
    %c0_1 = arith.constant 0 : index
    %0 = vector.load %arg1[%c0, %c0_0, %c0_1] : memref<4x8x32xf32, #tpu.memory_space<vmem>>, vector<4x8x32xf32>
    %1 = vector.shape_cast %0 : vector<4x8x32xf32> to vector<32x32xf32>
    %2 = arith.truncf %1 : vector<32x32xf32> to vector<32x32xbf16>
    %c0_2 = arith.constant 0 : index
    %c0_3 = arith.constant 0 : index
    %3 = vector.load %arg2[%c0_2, %c0_3] : memref<32x32xbf16, #tpu.memory_space<vmem>>, vector<32x32xbf16>
    %cst = arith.constant dense<0.000000e+00> : vector<32x32xf32>
    %4 = tpu.matmul %2, %3, %cst {dimension_numbers = #tpu.dot_dimension_numbers<[1], [0], [0], [1], [0, 0, 1, 1], [], []>} : vector<32x32xbf16>, vector<32x32xbf16>, vector<32x32xf32> -> vector<32x32xf32>
    %c0_4 = arith.constant 0 : index
    %c0_5 = arith.constant 0 : index
    %5 = vector.load %arg3[%c0_4, %c0_5] : memref<1x32xf32, #tpu.memory_space<vmem>>, vector<1x32xf32>
    %6 = vector.broadcast %5 : vector<1x32xf32> to vector<32x32xf32>
    %7 = arith.addf %4, %6 : vector<32x32xf32>
    %cst_6 = arith.constant 0.000000e+00 : f32
    %8 = vector.broadcast %cst_6 : f32 to vector<32x32xf32>
    %9 = arith.maximumf %7, %8 : vector<32x32xf32>
    %10 = arith.truncf %9 : vector<32x32xf32> to vector<32x32xbf16>
    %c0_7 = arith.constant 0 : index
    %c0_8 = arith.constant 0 : index
    %11 = vector.load %arg4[%c0_7, %c0_8] : memref<32x32xbf16, #tpu.memory_space<vmem>>, vector<32x32xbf16>
    %cst_9 = arith.constant dense<0.000000e+00> : vector<32x32xf32>
    %12 = tpu.matmul %10, %11, %cst_9 {dimension_numbers = #tpu.dot_dimension_numbers<[1], [0], [0], [1], [0, 0, 1, 1], [], []>} : vector<32x32xbf16>, vector<32x32xbf16>, vector<32x32xf32> -> vector<32x32xf32>
    %c0_10 = arith.constant 0 : index
    %c0_11 = arith.constant 0 : index
    %13 = vector.load %arg5[%c0_10, %c0_11] : memref<1x32xf32, #tpu.memory_space<vmem>>, vector<1x32xf32>
    %14 = vector.broadcast %13 : vector<1x32xf32> to vector<32x32xf32>
    %15 = arith.addf %12, %14 : vector<32x32xf32>
    %16 = vector.shape_cast %15 : vector<32x32xf32> to vector<4x8x32xf32>
    %cst_12 = arith.constant dense<0xFF800000> : vector<4x32xf32>
    %17 = vector.multi_reduction <maximumf>, %16, %cst_12 [1] : vector<4x8x32xf32> to vector<4x32xf32>
    %18 = vector.shape_cast %17 : vector<4x32xf32> to vector<4x1x32xf32>
    %19 = vector.broadcast %18 : vector<4x1x32xf32> to vector<4x8x32xf32>
    %20 = arith.subf %16, %19 : vector<4x8x32xf32>
    %21 = math.exp %20 : vector<4x8x32xf32>
    %cst_13 = arith.constant dense<0.000000e+00> : vector<4x32xf32>
    %22 = vector.multi_reduction <add>, %21, %cst_13 [1] : vector<4x8x32xf32> to vector<4x32xf32>
    %23 = vector.shape_cast %22 : vector<4x32xf32> to vector<4x1x32xf32>
    %24 = tpu.reciprocal %23 {approx = true} : vector<4x1x32xf32> -> vector<4x1x32xf32>
    %25 = vector.broadcast %24 : vector<4x1x32xf32> to vector<4x8x32xf32>
    %26 = arith.mulf %21, %25 : vector<4x8x32xf32>
    %27 = arith.mulf %0, %26 : vector<4x8x32xf32>
    %c0_14 = arith.constant 0 : index
    %c0_15 = arith.constant 0 : index
    %c0_16 = arith.constant 0 : index
    %28 = vector.load %arg6[%c0_14, %c0_15, %c0_16] : memref<4x8x32xf32, #tpu.memory_space<vmem>>, vector<4x8x32xf32>
    tpu.vector_store %arg6[%c0_14, %c0_15, %c0_16], %27 {strides = array<i32>} : memref<4x8x32xf32, #tpu.memory_space<vmem>>, vector<4x8x32xf32>,
    return
  }
  func.func @transform_0(%arg0: i32) -> (i32, i32, i32) {
    %c0_i32 = arith.constant 0 : i32
    %c0_i32_0 = arith.constant 0 : i32
    %c0_i32_1 = arith.constant 0 : i32
    return %arg0, %c0_i32, %c0_i32_0 : i32, i32, i32
  }
  func.func @transform_1(%arg0: i32) -> (i32, i32) {
    %c0_i32 = arith.constant 0 : i32
    %c0_i32_0 = arith.constant 0 : i32
    %c0_i32_1 = arith.constant 0 : i32
    return %c0_i32, %c0_i32_0 : i32, i32
  }
  func.func @transform_2(%arg0: i32) -> (i32, i32) {
    %c0_i32 = arith.constant 0 : i32
    %c0_i32_0 = arith.constant 0 : i32
    %c0_i32_1 = arith.constant 0 : i32
    return %c0_i32, %c0_i32_0 : i32, i32
  }
  func.func @transform_3(%arg0: i32) -> (i32, i32) {
    %c0_i32 = arith.constant 0 : i32
    %c0_i32_0 = arith.constant 0 : i32
    %c0_i32_1 = arith.constant 0 : i32
    return %c0_i32, %c0_i32_0 : i32, i32
  }
  func.func @transform_4(%arg0: i32) -> (i32, i32) {
    %c0_i32 = arith.constant 0 : i32
    %c0_i32_0 = arith.constant 0 : i32
    %c0_i32_1 = arith.constant 0 : i32
    return %c0_i32, %c0_i32_0 : i32, i32
  }
  func.func @transform_5(%arg0: i32) -> (i32, i32, i32) {
    %c0_i32 = arith.constant 0 : i32
    %c0_i32_0 = arith.constant 0 : i32
    %c0_i32_1 = arith.constant 0 : i32
    return %arg0, %c0_i32, %c0_i32_0 : i32, i32, i32
  }
}

</mosaic_0001>

<bundles_post_ra>
// kernel: tpu_custom_call.1
= control target key start
LH: loop header
LB: loop body
LE: loop exit
PB: predicated region body
PF: predicated region fallthrough
CT: control target
= control target key end

     0   :  { %10 = vsyncpa [#allocation3], 0  ;;  %s1255_s0 = inlined_call_operand.hbm [shape: f32[8,8,32], index: 0, kind: input, shape index: {}]   ;;  %s1256_s1 = inlined_call_operand.hbm [shape: bf16[32,32], index: 1, kind: input, shape index: {}]   ;;  %s1257_s2 = inlined_call_operand.vmem [shape: f32[1,32], index: 2, kind: input, shape index: {}]   ;;  %s1258_s3 = inlined_call_operand.hbm [shape: bf16[32,32], index: 3, kind: input, shape index: {}]   ;;  %s1259_s4 = inlined_call_operand.vmem [shape: f32[1,32], index: 4, kind: input, shape index: {}]   ;;  %s1260_s5 = inlined_call_operand.hbm [shape: f32[8,8,32], index: 5, kind: output, shape index: {}]  }
   0x1   :  { %12 = vsyncpa [#allocation3 + $0x1], 0 }
   0x2   :  { %13 = vsyncpa [#allocation6], 0 }
   0x3   :  { %14 = vsyncpa [#allocation4], 0 }
   0x4   :  { %16 = vsyncpa [#allocation4 + $0x1], 0  ;;  %s979_s18 = smov 0   ;;  %s981_s19 = smov 0  }
   0x5   :  { %s983_s20 = smov 0   ;;  %s985_s21 = smov 0  }
   0x6 LB: > { %s1000_s22 = sadd.s32 4294967295, %s937_s21   ;;  %s634_s23 = sadd.s32 4294967294, %s937_s21   ;;  %s937_s21 = sphi %s985_s21, %s1280_s21   ;;  %s933_s20 = sphi %s983_s20, %s1279_s20   ;;  %s929_s19 = sphi %s981_s19, %s1278_s19   ;;  %s925_s18 = sphi %s979_s18, %s1277_s18  }
   0x7   : > { %p42_p0 = scmp.ne.s32.totalorder %s929_s19, %s925_s18  ;;  %p1261_p1 = scmp.eq.s32.totalorder %s1000_s22, 0 }
   0x8   : > { %p156_p3 = scmp.eq.s32.totalorder %s634_s23, 1  ;;  %p635_p5 = scmp.ge.s32.totalorder %s937_s21, 1 }
   0x9   : > { %p1009_p4 = por %p1261_p1, %p42_p0  ;;  %p163_p7 = scmp.lt.s32.totalorder %s937_s21, 3 }
   0xa   : > { %p1014_p6 = por %p156_p3, %p42_p0  ;;  %s939_s27 = smov [#allocation5]  }
   0xb   : > { %s1264_s24 = scalar_select %p1009_p4, 1, 0 }
   0xc   : > { %s1265_s25 = scalar_select %p1014_p6, 1, 0 }
   0xd   : > { %p1019_p8 = pnand %p635_p5, %p163_p7  ;;  %s175_s28 = sshll.u32 %s939_s27, 4  ;;  %s1023_s28 = int_to_ptr.vmem [resolvable:$true] %s175_s28 }
   0xe   : > { %s940_s30 = smov [#allocation7]   ;;  %s781_s9 = scalar_lea.hbm %s1256_s1, 256 }
   0xf   : > { %p700_p9 = pneg %p1019_p8  ;;  %s191_s6 = sshll.u32 %s940_s30, 4  ;;  %s1034_s6 = int_to_ptr.vmem [resolvable:$true] %s191_s6 }
  0x10   : > { %p782_p12 = scmp.ne.s32.totalorder %s1256_s1, %s781_s9  ;;  %p788_p5 = scmp.lt.u32.totalorder %s781_s9, %s1256_s1 }
  0x11   : > { %p1030_p11 = pnand %p700_p9, %p1261_p1 }
  0x13   : > { %p783_p13 = pneg %p1030_p11 }
  0x15   : > { %p784_p0 = pnand %p783_p13, %p782_p12 }
  0x17   : > { %p785_p3 = pneg %p784_p0 }
  0x19   : > { %p790_p7 = pnand %p788_p5, %p785_p3 }
  0x1b   : > { %793 = shalt.err (!%p790_p7)
}
  0x1c   : > { %s794_s14 = scalar_lea.vmem %s1023_s28, 256  ;;  %p802_p2 = scmp.lt.s32.totalorder %s1023_s28, %s1023_s28 }
  0x1d   : > { %p795_p9 = scmp.ne.s32.totalorder %s1023_s28, %s794_s14  ;;  %p803_p12 = scmp.lt.s32.totalorder %s794_s14, %s794_s14 }
  0x1f   : > { %p797_p10 = pnand %p795_p9, %p783_p13  ;;  %p804_p0 = por %p803_p12, %p802_p2 }
  0x21   : > { %p798_p1 = pneg %p797_p10 }
  0x23   : > { %p805_p6 = pnand %p804_p0, %p798_p1 }
  0x25   : > { %808 = shalt.err (!%p805_p6)
}
  0x26   : > { %s941_s15 = smov 64   ;;  %s942_s16 = smov 4  }
  0x27   : > { %703 = dma.hbm_to_vmem [thread:$0]  (!%p1030_p11), %s1256_s1, 256, %s1023_s28, [#allocation6], %s941_s15, %s941_s15, %s942_s16  }
  0x28   : > { %s809_s7 = scalar_lea.hbm %s1258_s3, 256 }
  0x29   : > { %p810_p2 = scmp.ne.s32.totalorder %s1258_s3, %s809_s7  ;;  %p816_p10 = scmp.lt.u32.totalorder %s809_s7, %s1258_s3 }
  0x2b   : > { %p812_p1 = pnand %p810_p2, %p783_p13 }
  0x2d   : > { %p813_p6 = pneg %p812_p1 }
  0x2f   : > { %p818_p3 = pnand %p816_p10, %p813_p6 }
  0x31   : > { %821 = shalt.err (!%p818_p3)
}
  0x32   : > { %s822_s28 = scalar_lea.vmem %s1034_s6, 256  ;;  %p830_p12 = scmp.lt.s32.totalorder %s1034_s6, %s1034_s6 }
  0x33   : > { %p823_p5 = scmp.ne.s32.totalorder %s1034_s6, %s822_s28  ;;  %p831_p0 = scmp.lt.s32.totalorder %s822_s28, %s822_s28 }
  0x35   : > { %p825_p7 = pnand %p823_p5, %p783_p13  ;;  %p832_p2 = por %p831_p0, %p830_p12 }
  0x37   : > { %p826_p9 = pneg %p825_p7 }
  0x39   : > { %p833_p1 = pnand %p832_p2, %p826_p9 }
  0x3b   : > { %836 = shalt.err (!%p833_p1)
}
  0x3c   : > { %706 = dma.hbm_to_vmem [thread:$0]  (!%p1030_p11), %s1258_s3, 256, %s1034_s6, [#allocation6], %s941_s15, %s941_s15, %s942_s16  }
  0x3d   : > { %s1089_s14 = sadd.s32 1, %s937_s21   ;;  %s29_s29 = sadd.s32 1, %s933_s20 }
  0x3e   : > { %s26_s17 = ssub.s32 %s937_s21, %s1089_s14  ;;  %p36_p13 = scmp.ne.s32.totalorder %s933_s20, %s929_s19 }
  0x3f   : > { %p27_p6 = scmp.eq.s32.totalorder %s26_s17, 0  ;;  %p37_p10 = scmp.eq.s32.totalorder %s937_s21, 0 }
  0x40   : > { %p1268_p3 = scmp.eq.s32.totalorder %s1000_s22, 1  ;;  %p717_p7 = scmp.lt.s32.totalorder %s937_s21, 2 }
  0x41   : > { %s1105_s27 = scalar_select %p27_p6, %s933_s20, %s29_s29  }
  0x42   : > { %p1099_p5 = por %p1268_p3, %p36_p13  ;;  %p38_p9 = por %p37_p10, %p36_p13 }
  0x43   : > { %s208_s30 = sand.u32 1, %s933_s20   ;;  %s662_s6 = sshll.u32 %s937_s21, 9 }
  0x44   : > { %s1269_s23 = scalar_select %p1099_p5, 1, 0 }
  0x45   : > { %s639_s7 = sshll.u32 %s208_s30, 5  ;;  %s1112_s8 = scalar_lea.hbm %s1255_s0, %s662_s6 }
  0x46   : > { %s212_s9 = scalar_lea.vmem [#allocation2], %s639_s7  ;;  %p1116_p11 = pnand %p717_p7, %p38_p9 }
  0x47   : > { %s219_s10 = sshll.u32 %s212_s9, 4  ;;  %s1120_s28 = scalar_lea.sflag [#allocation3], %s208_s30  ;;  %s1114_s10 = int_to_ptr.vmem [resolvable:$true] %s219_s10 }
  0x48   : > { %s837_s12 = scalar_lea.hbm %s1112_s8, 512  ;;  %p839_p0 = pneg %p1116_p11 }
  0x49   : > { %p838_p12 = scmp.ne.s32.totalorder %s1112_s8, %s837_s12  ;;  %s842_s17 = scalar_lea.hbm %s1255_s0, 1024 }
  0x4a   : > { %p843_p13 = scmp.lt.u32.totalorder %s1112_s8, %s1255_s0  ;;  %p844_p6 = scmp.lt.u32.totalorder %s842_s17, %s837_s12 }
  0x4b   : > { %p840_p2 = pnand %p839_p0, %p838_p12  ;;  %p846_p3 = scmp.lt.u32.totalorder %s837_s12, %s1112_s8 }
  0x4c   : > { %p845_p10 = por %p844_p6, %p843_p13 }
  0x4d   : > { %p841_p1 = pneg %p840_p2 }
  0x4e   : > { %p847_p7 = por %p846_p3, %p845_p10 }
  0x50   : > { %p848_p9 = pnand %p847_p7, %p841_p1 }
  0x52   : > { %851 = shalt.err (!%p848_p9)
}
  0x53   : > { %s852_s30 = scalar_lea.vmem %s1114_s10, 512  ;;  %s943_s15 = smov [#allocation2]  }
  0x54   : > { %p853_p12 = scmp.ne.s32.totalorder %s1114_s10, %s852_s30  ;;  %s857_s16 = sshll.u32 %s943_s15, 4  ;;  %s858_s16 = int_to_ptr.vmem [resolvable:$false] %s857_s16 }
  0x55   : > { %s859_s9 = scalar_lea.vmem %s858_s16, 1024  ;;  %p860_p4 = scmp.lt.s32.totalorder %s1114_s10, %s858_s16 }
  0x56   : > { %p855_p2 = pnand %p853_p12, %p839_p0  ;;  %p861_p13 = scmp.lt.s32.totalorder %s859_s9, %s852_s30 }
  0x58   : > { %p856_p5 = pneg %p855_p2  ;;  %p862_p6 = por %p861_p13, %p860_p4 }
  0x5a   : > { %p863_p10 = pnand %p862_p6, %p856_p5 }
  0x5c   : > { %866 = shalt.err (!%p863_p10)
}
  0x5d   : > { %s944_s12 = smov 128   ;;  %s945_s13 = smov 8  }
  0x5e   : > { %710 = dma.hbm_to_vmem [thread:$0]  (!%p1116_p11), %s1112_s8, 512, %s1114_s10, %s1120_s28, %s944_s12, %s944_s12, %s945_s13  }
  0x5f   : > { %231 = sbr.rel (%p1019_p8) target bundleno = 625 (0x271), region = 40  ;;  %s1151_s29 = sand.u32 (!%p1019_p8), 1, %s929_s19  }
  0x60   : > { %s643_s17 = sshll.u32 (!%p1019_p8), %s1151_s29, 5  ;;  %s234_s7 = scalar_lea.sflag (!%p1019_p8), [#allocation3], %s1151_s29 }
  0x61   : > { %s237_s6 = scalar_lea.vmem (!%p1019_p8), [#allocation2], %s643_s17  ;;  %p1271_p4 = scmp.ne.s32.totalorder (!%p1019_p8), %s1264_s24, 0 }
  0x66   : > { %912 = dma.done.wait (%p1271_p4), %s234_s7, 512  }
  0x67   : > { %914 = vsyncadd (%p1271_p4), %s234_s7, 4294966784  ;;  %p1272_p5 = scmp.eq.s32.totalorder %s1000_s22, 0 }
  0x69   : > { %916 = dma.done.wait (%p1272_p5), [#allocation6], 512   ;;  %p1273_p8 = pmov %p1272_p5 }
  0x6a   : > { %v761_v0 = vld [vmem:[#allocation5] sm:$0xff]   ;;  %v762_v1 = vld [vmem:[#allocation5 + $0x8] sm:$0xff]   ;;  %vm304_vm0 = vcmask 261120   ;;  %v1169_v4 = vld [vmem:[%s237_s6 + $0x10] sm:$0xff]  ;;  %s663_s11 = sshll.u32 %s1000_s22, 9  ;;  %s271_s28 = scalar_lea.vmem [#allocation8], %s643_s17 }
  0x6b   : > { %918 = vsyncadd (%p1273_p8), [#allocation6], 4294966784  ;;  %672 = vmatprep.subr.bf16.mxu0 %v761_v0  ;;  %v1165_v2 = vld [vmem:[%s237_s6] sm:$0xff]  ;;  %v1167_v3 = vld [vmem:[%s237_s6 + $0x8] sm:$0xff]  ;;  %s542_s30 = sshll.u32 %s271_s28, 4  ;;  %s1205_s22 = scalar_lea.hbm %s1260_s5, %s663_s11  ;;  %s1207_s30 = int_to_ptr.vmem [resolvable:$true] %s542_s30 }
  0x6c   : > { %673 = vmatpush3.bf16.msra.mxu0 %v761_v0  ;;  %v279_v5 = vpack.c.bf16 %v1167_v3, %v1165_v2  ;;  %v1173_v6 = vld [vmem:[%s237_s6 + $0x18] sm:$0xff]  ;;  %v763_v8 = vld [vmem:[#allocation7] sm:$0xff]   ;;  %v647_v10 = vld [vmem:[%s1257_s2] ss:$0 sm:$0xff]  ;;  %s529_s9 = scalar_lea.sflag [#allocation4], %s1151_s29  ;;  %s867_s12 = scalar_lea.vmem %s1207_s30, 512 }
  0x6d   : > { %674 = vmatprep.subr.bf16.mxu0 %v762_v1  ;;  %v280_v7 = vpack.c.bf16 %v1173_v6, %v1169_v4  ;;  %680 = vmatprep.subr.bf16.mxu1 %v763_v8  ;;  %v764_v9 = vld [vmem:[#allocation7 + $0x8] sm:$0xff]   ;;  %v652_v25 = vld [vmem:[%s1259_s4] ss:$0 sm:$0xff]  ;;  %p868_p11 = scmp.ne.s32.totalorder %s1207_s30, %s867_s12  ;;  %p1274_p0 = scmp.ne.s32.totalorder %s1269_s23, 0 }
  0x6e   : > { %676 = vmatprep.mubr.msk.bf16.mxu0 %vm304_vm0, %v279_v5  ;;  %681 = vmatpush3.bf16.msra.mxu1 %v763_v8  ;;  %s946_s13 = smov [#allocation8]  }
  0x6f   : > { %682 = vmatprep.subr.bf16.mxu1 %v764_v9  ;;  %p869_p1 = pnand %p868_p11, %p1274_p0  ;;  %s871_s17 = sshll.u32 %s946_s13, 4  ;;  %s872_s17 = int_to_ptr.vmem [resolvable:$false] %s871_s17 }
  0x70   : > { %675 = vmatpush3.bf16.msra.mxu0 %v762_v1  ;;  %s873_s7 = scalar_lea.vmem %s872_s17, 1024  ;;  %p874_p7 = scmp.lt.s32.totalorder %s1207_s30, %s872_s17 }
  0x71   : > { %p870_p3 = pneg %p869_p1  ;;  %p875_p9 = scmp.lt.s32.totalorder %s873_s7, %s867_s12 }
  0x72   : > { %683 = vmatpush3.bf16.msra.mxu1 %v764_v9 }
  0x73   : > { %677 = vmatmul.mubr.msk.bf16.vlgmr.msra.gmra.mrb[0].mxu0 %vm304_vm0, %v280_v7  ;;  %p876_p12 = por %p875_p9, %p874_p7 }
  0x75   : > { %p877_p2 = pnand %p876_p12, %p870_p3 }
 0x146   : > { %v678_v11 = vpop.f32.mrb[0].mxu0 }
 0x147   : > { %v354_v12 = vadd.f32 %v678_v11, %v647_v10  ;;  %v345_v13 = vpop.f32.mrb[1].mxu0 }
 0x148   : > { %v346_v14 = vadd.f32 %v647_v10, %v345_v13  ;;  %v679_v15 = vpop.f32.mrb[2].mxu0 }
 0x149   : > { %v357_v16 = vadd.f32 %v679_v15, %v647_v10  ;;  %v348_v17 = vpop.f32.mrb[3].mxu0  ;;  %v362_v19 = vmax.f32 %v354_v12, 0.0 }
 0x14a   : > { %v349_v18 = vadd.f32 %v647_v10, %v348_v17  ;;  %v360_v21 = vmax.f32 %v346_v14, 0.0 }
 0x14b   : > { %v363_v20 = vmax.f32 %v357_v16, 0.0 }
 0x14c   : > { %v361_v22 = vmax.f32 %v349_v18, 0.0 }
 0x14d   : > { %v365_v23 = vpack.c.bf16 %v363_v20, %v362_v19 }
 0x14e   : > { %v364_v24 = vpack.c.bf16 %v361_v22, %v360_v21 }
 0x150   : > { %684 = vmatprep.mubr.msk.bf16.mxu1 %vm304_vm0, %v364_v24 }
 0x151   : > { %685 = vmatmul.mubr.msk.bf16.vlgmr.msra.gmra.mrb[0].mxu1 %vm304_vm0, %v365_v23 }
 0x224   : > { %v686_v26 = vpop.f32.mrb[0].mxu1 }
 0x225   : > { %v438_v27 = vadd.f32 %v686_v26, %v652_v25  ;;  %v429_v28 = vpop.f32.mrb[1].mxu1 }
 0x226   : > { %v430_v29 = vadd.f32 %v652_v25, %v429_v28  ;;  %v687_v30 = vpop.f32.mrb[2].mxu1 }
 0x227   : > { %v458_v31 = vsel %vm304_vm0, %v438_v27, -inf  ;;  %v441_v32 = vadd.f32 %v687_v30, %v652_v25  ;;  %v432_v33 = vpop.f32.mrb[3].mxu1 }
 0x228   : > { %v459_v34 = vrot.slane %v458_v31, 4  ;;  %v444_v35 = vsel %vm304_vm0, %v430_v29, -inf  ;;  %v433_v36 = vadd.f32 %v652_v25, %v432_v33 }
 0x229   : > { %v445_v37 = vrot.slane %v444_v35, 4  ;;  %v465_v38 = vsel %vm304_vm0, %v441_v32, -inf }
 0x22a   : > { %v460_v39 = vmax.f32 %v458_v31, %v459_v34  ;;  %v466_v40 = vrot.slane %v465_v38, 4  ;;  %v451_v41 = vsel %vm304_vm0, %v433_v36, -inf }
 0x22b   : > { %v446_v42 = vmax.f32 %v444_v35, %v445_v37  ;;  %v452_v43 = vrot.slane %v451_v41, 4 }
 0x22c   : > { %v461_v44 = vrot.slane %v460_v39, 2  ;;  %v467_v45 = vmax.f32 %v465_v38, %v466_v40 }
 0x22d   : > { %v447_v46 = vrot.slane %v446_v42, 2  ;;  %v453_v47 = vmax.f32 %v451_v41, %v452_v43 }
 0x22e   : > { %v462_v48 = vmax.f32 %v460_v39, %v461_v44  ;;  %v468_v49 = vrot.slane %v467_v45, 2 }
 0x22f   : > { %v448_v50 = vmax.f32 %v446_v42, %v447_v46  ;;  %v454_v51 = vrot.slane %v453_v47, 2 }
 0x230   : > { %v463_v52 = vrot.slane %v462_v48, 1  ;;  %v469_v53 = vmax.f32 %v467_v45, %v468_v49 }
 0x231   : > { %v449_v54 = vrot.slane %v448_v50, 1  ;;  %v455_v55 = vmax.f32 %v453_v47, %v454_v51 }
 0x232   : > { %v464_v56 = vmax.f32 %v462_v48, %v463_v52  ;;  %v470_v57 = vrot.slane %v469_v53, 1 }
 0x233   : > { %v450_v58 = vmax.f32 %v448_v50, %v449_v54  ;;  %v456_v59 = vrot.slane %v455_v55, 1 }
 0x234   : > { %v474_v60 = vsub.f32 %v438_v27, %v464_v56  ;;  %v471_v61 = vmax.f32 %v469_v53, %v470_v57 }
 0x235   : > { %v472_v62 = vsub.f32 %v430_v29, %v450_v58  ;;  %v457_v63 = vmax.f32 %v455_v55, %v456_v59 }
 0x236   : > { %v480_v0 = vmul.f32 1.442695, %v474_v60  ;;  %v475_v1 = vsub.f32 %v441_v32, %v471_v61 }
 0x237   : > { %v476_v5 = vmul.f32 1.442695, %v472_v62  ;;  %v473_v7 = vsub.f32 %v433_v36, %v457_v63 }
 0x238   : > { %765 = vpow2.f32 %v480_v0  ;;  %v482_v8 = vmul.f32 1.442695, %v475_v1 }
 0x239   : > { %767 = vpow2.f32 %v476_v5  ;;  %v478_v9 = vmul.f32 1.442695, %v473_v7 }
 0x23a   : > { %769 = vpow2.f32 %v482_v8 }
 0x23b   : > { %771 = vpow2.f32 %v478_v9 }
 0x242   : > { %v766_v10 = vpop.eup %765 }
 0x243   : > { %v768_v11 = vpop.eup %767  ;;  %v498_v12 = vsel %vm304_vm0, %v766_v10, 0.0 }
 0x244   : > { %v770_v13 = vpop.eup %769  ;;  %v499_v14 = vrot.slane %v498_v12, 4  ;;  %v484_v15 = vsel %vm304_vm0, %v768_v11, 0.0 }
 0x245   : > { %v772_v16 = vpop.eup %771  ;;  %v485_v17 = vrot.slane %v484_v15, 4  ;;  %v505_v18 = vsel %vm304_vm0, %v770_v13, 0.0 }
 0x246   : > { %v500_v19 = vadd.f32 %v499_v14, %v498_v12  ;;  %v506_v20 = vrot.slane %v505_v18, 4  ;;  %v491_v21 = vsel %vm304_vm0, %v772_v16, 0.0 }
 0x247   : > { %v486_v22 = vadd.f32 %v485_v17, %v484_v15  ;;  %v492_v23 = vrot.slane %v491_v21, 4 }
 0x248   : > { %v501_v24 = vrot.slane %v500_v19, 2  ;;  %v507_v25 = vadd.f32 %v506_v20, %v505_v18 }
 0x249   : > { %v487_v26 = vrot.slane %v486_v22, 2  ;;  %v493_v27 = vadd.f32 %v492_v23, %v491_v21 }
 0x24a   : > { %v502_v28 = vadd.f32 %v501_v24, %v500_v19  ;;  %v508_v29 = vrot.slane %v507_v25, 2 }
 0x24b   : > { %v488_v30 = vadd.f32 %v487_v26, %v486_v22  ;;  %v494_v31 = vrot.slane %v493_v27, 2 }
 0x24c   : > { %v503_v32 = vrot.slane %v502_v28, 1  ;;  %v509_v33 = vadd.f32 %v508_v29, %v507_v25 }
 0x24d   : > { %v489_v34 = vrot.slane %v488_v30, 1  ;;  %v495_v35 = vadd.f32 %v494_v31, %v493_v27 }
 0x24e   : > { %v504_v36 = vadd.f32 %v503_v32, %v502_v28  ;;  %v510_v37 = vrot.slane %v509_v33, 1 }
 0x24f   : > { %v490_v38 = vadd.f32 %v489_v34, %v488_v30  ;;  %v496_v39 = vrot.slane %v495_v35, 1 }
 0x250   : > { %773 = vrcp.f32 %v504_v36  ;;  %v511_v40 = vadd.f32 %v510_v37, %v509_v33 }
 0x251   : > { %775 = vrcp.f32 %v490_v38  ;;  %v497_v41 = vadd.f32 %v496_v39, %v495_v35 }
 0x252   : > { %777 = vrcp.f32 %v511_v40 }
 0x253   : > { %779 = vrcp.f32 %v497_v41 }
 0x25a   : > { %v774_v42 = vpop.eup %773 }
 0x25b   : > { %v776_v43 = vpop.eup %775  ;;  %v518_v44 = vmul.f32 %v774_v42, %v766_v10 }
 0x25c   : > { %v778_v45 = vpop.eup %777  ;;  %v516_v46 = vmul.f32 %v776_v43, %v768_v11 }
 0x25d   : > { %v780_v47 = vpop.eup %779  ;;  %v522_v48 = vmul.f32 %v518_v44, %v1169_v4  ;;  %v519_v49 = vmul.f32 %v778_v45, %v770_v13 }
 0x25e   : > { %v520_v50 = vmul.f32 %v516_v46, %v1165_v2  ;;  %v517_v51 = vmul.f32 %v780_v47, %v772_v16 }
 0x25f   : > { %v523_v52 = vmul.f32 %v519_v49, %v1173_v6  ;;  %526 = vst.msk [vmem:[%s271_s28 + $0x10] sm:$0xff] %vm304_vm0, %v522_v48 }
 0x260   : > { %v521_v4 = vmul.f32 %v517_v51, %v1167_v3  ;;  %524 = vst.msk [vmem:[%s271_s28] sm:$0xff] %vm304_vm0, %v520_v50 }
 0x261   : > { %527 = vst.msk [vmem:[%s271_s28 + $0x18] sm:$0xff] %vm304_vm0, %v523_v52 }
 0x262   : > { %525 = vst.msk [vmem:[%s271_s28 + $0x8] sm:$0xff] %vm304_vm0, %v521_v4 }
 0x263   : > { %880 = shalt.err (!%p877_p2)
}
 0x264   : > { %s881_s6 = scalar_lea.hbm %s1205_s22, 512  ;;  %s885_s8 = scalar_lea.hbm %s1260_s5, 1024 }
 0x265   : > { %p882_p13 = scmp.ne.s32.totalorder %s1205_s22, %s881_s6  ;;  %p886_p4 = scmp.lt.u32.totalorder %s1205_s22, %s1260_s5 }
 0x266   : > { %p887_p5 = scmp.lt.u32.totalorder %s885_s8, %s881_s6  ;;  %p889_p11 = scmp.lt.u32.totalorder %s881_s6, %s1205_s22 }
 0x267   : > { %p883_p6 = pnand %p882_p13, %p1274_p0 }
 0x268   : > { %p888_p8 = por %p887_p5, %p886_p4 }
 0x269   : > { %p884_p10 = pneg %p883_p6 }
 0x26a   : > { %p890_p1 = por %p889_p11, %p888_p8 }
 0x26c   : > { %p891_p3 = pnand %p890_p1, %p884_p10 }
 0x26e   : > { %894 = shalt.err (!%p891_p3)
}
 0x26f   : > { %s947_s28 = smov 128   ;;  %s948_s15 = smov 8  }
 0x270   : > { %698 = dma.vmem_to_hbm [thread:$0]  (%p1274_p0), %s1207_s30, 512, %s1205_s22, %s529_s9, %s947_s28, %s947_s28, %s948_s15  }
 0x271 PF: > { %s557_s16 = sand.u32 1, %s925_s18   ;;  %p1275_p7 = scmp.ne.s32.totalorder %s1265_s25, 0 }
 0x272   : > { %p1276_p9 = scmp.ge.s32.totalorder %s937_s21, 2  ;;  %s558_s12 = scalar_lea.sflag [#allocation4], %s557_s16 }
 0x274   : > { %p712_p12 = pnand %p1276_p9, %p1275_p7 }
 0x276   : > { %920 = dma.done.wait (!%p712_p12), %s558_s12, 512  }
 0x277   : > { %922 = vsyncadd (!%p712_p12), %s558_s12, 4294966784  ;;  %p19_p2 = scmp.ge.s32.totalorder %s1089_s14, 4   ;;  %s1277_s18 = smov %s929_s19 }
 0x278   : > { %s1278_s19 = smov %s933_s20  ;;  %s1279_s20 = smov %s1105_s27 }
 0x279   : > { %s1280_s21 = smov %s1089_s14  ;;  %21 = sbr.rel (!%p19_p2) target bundleno = 6 (0x6), region = 93 }
 0x280   :  { %563 = vsyncpa [#allocation3], 1 }
 0x281   :  { %565 = vsyncpa [#allocation3 + $0x1], 1 }
 0x282   :  { %566 = vsyncpa [#allocation6], 1 }
 0x283   :  { %567 = vsyncpa [#allocation4], 1 }
 0x284   :  { %569 = vsyncpa [#allocation4 + $0x1], 1 }

</bundles_post_ra>
